<compile_context>
chip_gen: v6e
topology: v6e:2x2x1
jax: 0.10.0
libtpu: 0.0.40
codegen_flags: <defaults>
</compile_context>

<pallas_src>
import math

import jax
import jax.numpy as jnp
from jax.experimental import pallas as pl
from jax.experimental.pallas import tpu as pltpu

# ---- config (small, consistent with the module) -----------------------------
BATCH = 2
SEQ = 8
NUM_HIDDENS = 32
NUM_MLP_INTERMEDIATE = 64

LANE = 128  # TPU lane width: output last dim padded to a multiple of this.


def mlp_kernel(x_ref, w1_ref, b1_ref, w2_ref, b2_ref, o_ref):
    # x_ref:  (R, H)    w1_ref: (H, I)    b1_ref: (1, I)
    # w2_ref: (I, Hp)   b2_ref: (1, Hp)   o_ref:  (R, Hp)   (Hp = lane-dense H)
    x = x_ref[...]                         # native dtype straight into the MXU
    b1 = b1_ref[...]                       # hoisted once; broadcasts over rows
    b2 = b2_ref[...]

    h = jnp.dot(x, w1_ref[...], preferred_element_type=jnp.float32) + b1
    h = jnp.maximum(h, 0.0)                # ReLU on the VPU
    y = jnp.dot(h, w2_ref[...], preferred_element_type=jnp.float32) + b2

    o_ref[...] = y.astype(o_ref.dtype)     # lane-dense (Hp = 128k): unmasked vst


def mlp(x, params):
    """x: (B, S, H) float32.  params: dict with w1 (H,I), b1 (1,I), w2 (I,H), b2 (1,H)."""
    B, S, H = x.shape
    I = params["w1"].shape[1]
    R = B * S
    Hp = ((H + LANE - 1) // LANE) * LANE   # round output dim up to lane width

    x2d = x.reshape(R, H)                  # fold batch+seq: single grid step
    # Zero-pad the second linear's output dim (and bias) so the kernel writes
    # a lane-dense (R, Hp) slab.  Layout plumbing only, no extra compute.
    w2_p = jnp.pad(params["w2"], ((0, 0), (0, Hp - H)))
    b2_p = jnp.pad(params["b2"], ((0, 0), (0, Hp - H)))

    flops = 2 * R * H * I + 2 * R * I * Hp
    bytes_accessed = 4 * (
        x2d.size + params["w1"].size + params["b1"].size
        + w2_p.size + b2_p.size + R * Hp
    )

    y2d = pl.pallas_call(
        mlp_kernel,
        out_shape=jax.ShapeDtypeStruct((R, Hp), x.dtype),
        grid_spec=pltpu.PrefetchScalarGridSpec(
            num_scalar_prefetch=0,
            grid=(1,),                      # single invocation, no per-step overhead
            in_specs=[
                pl.BlockSpec((R, H), lambda i: (0, 0)),
                pl.BlockSpec((H, I), lambda i: (0, 0)),
                pl.BlockSpec((1, I), lambda i: (0, 0)),
                pl.BlockSpec((I, Hp), lambda i: (0, 0)),
                pl.BlockSpec((1, Hp), lambda i: (0, 0)),
            ],
            out_specs=pl.BlockSpec((R, Hp), lambda i: (0, 0)),
        ),
        compiler_params=pltpu.CompilerParams(
            dimension_semantics=("arbitrary",),
        ),
        cost_estimate=pl.CostEstimate(
            flops=flops, transcendentals=0, bytes_accessed=bytes_accessed),
    )(x2d, params["w1"], params["b1"], w2_p, b2_p)

    return y2d[:, :H].reshape(B, S, H)     # drop the zero-padded lanes


# ---- deterministic parameter init (torch nn.Linear uniform fan-in init) -----
def init_params(key):
    H, I = NUM_HIDDENS, NUM_MLP_INTERMEDIATE
    ks = jax.random.split(key, 4)

    def lin(k, fan_in, shape):
        bound = 1.0 / math.sqrt(fan_in)
        return jax.random.uniform(k, shape, jnp.float32, -bound, bound)

    return {
        # stored as (in, out) so the kernel computes x @ W
        "w1": lin(ks[0], H, (H, I)),
        "b1": lin(ks[1], H, (1, I)),
        "w2": lin(ks[2], I, (I, H)),
        "b2": lin(ks[3], I, (1, H)),
    }


# ---- pure-JAX reference (mirrors the PyTorch forward) ------------------------
def mlp_ref(x, p):
    h = jnp.maximum(x @ p["w1"] + p["b1"], 0.0)
    return h @ p["w2"] + p["b2"]


if __name__ == "__main__":
    key = jax.random.PRNGKey(0)
    kx, kp = jax.random.split(key)
    x = jax.random.normal(kx, (BATCH, SEQ, NUM_HIDDENS), jnp.float32)
    params = init_params(kp)

    out = mlp(x, params)
    out = jax.block_until_ready(out)

    ref = mlp_ref(x, params)
    assert out.shape == (BATCH, SEQ, NUM_HIDDENS)
    assert jnp.allclose(out, ref, atol=1e-5, rtol=1e-5), (
        f"max err {jnp.max(jnp.abs(out - ref))}"
    )
    print("KERNEL_OK")
</pallas_src>

<mosaic_0001>
module attributes {stable_mosaic.version = 11 : i64} {
  func.func @mlp_kernel(%arg0: i32, %arg1: memref<16x32xf32, #tpu.memory_space<vmem>>, %arg2: memref<32x64xf32, #tpu.memory_space<vmem>>, %arg3: memref<1x64xf32, #tpu.memory_space<vmem>>, %arg4: memref<64x128xf32, #tpu.memory_space<vmem>>, %arg5: memref<1x128xf32, #tpu.memory_space<vmem>>, %arg6: memref<16x128xf32, #tpu.memory_space<vmem>>) attributes {dimension_semantics = [#tpu.dimension_semantics<arbitrary>], iteration_bounds = array<i64: 1>, scalar_prefetch = 0 : i64, scratch_operands = 0 : i64, tpu.core_type = #tpu.core_type<tc>, window_params = [{pipeline_mode = #tpu.pipeline_mode<synchronous>, transform_indices = @transform_0, window_bounds = array<i64: 16, 32>}, {pipeline_mode = #tpu.pipeline_mode<synchronous>, transform_indices = @transform_1, window_bounds = array<i64: 32, 64>}, {pipeline_mode = #tpu.pipeline_mode<synchronous>, transform_indices = @transform_2, window_bounds = array<i64: 1, 64>}, {pipeline_mode = #tpu.pipeline_mode<synchronous>, transform_indices = @transform_3, window_bounds = array<i64: 64, 128>}, {pipeline_mode = #tpu.pipeline_mode<synchronous>, transform_indices = @transform_4, window_bounds = array<i64: 1, 128>}, {pipeline_mode = #tpu.pipeline_mode<synchronous>, transform_indices = @transform_5, window_bounds = array<i64: 16, 128>}]} {
    %c0 = arith.constant 0 : index
    %c0_0 = arith.constant 0 : index
    %0 = vector.load %arg1[%c0, %c0_0] : memref<16x32xf32, #tpu.memory_space<vmem>>, vector<16x32xf32>
    %c0_1 = arith.constant 0 : index
    %c0_2 = arith.constant 0 : index
    %1 = vector.load %arg3[%c0_1, %c0_2] : memref<1x64xf32, #tpu.memory_space<vmem>>, vector<1x64xf32>
    %c0_3 = arith.constant 0 : index
    %c0_4 = arith.constant 0 : index
    %2 = vector.load %arg5[%c0_3, %c0_4] : memref<1x128xf32, #tpu.memory_space<vmem>>, vector<1x128xf32>
    %c0_5 = arith.constant 0 : index
    %c0_6 = arith.constant 0 : index
    %3 = vector.load %arg2[%c0_5, %c0_6] : memref<32x64xf32, #tpu.memory_space<vmem>>, vector<32x64xf32>
    %cst = arith.constant dense<0.000000e+00> : vector<16x64xf32>
    %4 = tpu.matmul %0, %3, %cst {dimension_numbers = #tpu.dot_dimension_numbers<[1], [0], [0], [1], [0, 0, 1, 1], [], []>} : vector<16x32xf32>, vector<32x64xf32>, vector<16x64xf32> -> vector<16x64xf32>
    %5 = vector.broadcast %1 : vector<1x64xf32> to vector<16x64xf32>
    %6 = arith.addf %4, %5 : vector<16x64xf32>
    %cst_7 = arith.constant 0.000000e+00 : f32
    %7 = vector.broadcast %cst_7 : f32 to vector<16x64xf32>
    %8 = arith.maximumf %6, %7 : vector<16x64xf32>
    %c0_8 = arith.constant 0 : index
    %c0_9 = arith.constant 0 : index
    %9 = vector.load %arg4[%c0_8, %c0_9] : memref<64x128xf32, #tpu.memory_space<vmem>>, vector<64x128xf32>
    %cst_10 = arith.constant dense<0.000000e+00> : vector<16x128xf32>
    %10 = tpu.matmul %8, %9, %cst_10 {dimension_numbers = #tpu.dot_dimension_numbers<[1], [0], [0], [1], [0, 0, 1, 1], [], []>} : vector<16x64xf32>, vector<64x128xf32>, vector<16x128xf32> -> vector<16x128xf32>
    %11 = vector.broadcast %2 : vector<1x128xf32> to vector<16x128xf32>
    %12 = arith.addf %10, %11 : vector<16x128xf32>
    %c0_11 = arith.constant 0 : index
    %c0_12 = arith.constant 0 : index
    %13 = vector.load %arg6[%c0_11, %c0_12] : memref<16x128xf32, #tpu.memory_space<vmem>>, vector<16x128xf32>
    tpu.vector_store %arg6[%c0_11, %c0_12], %12 {strides = array<i32>} : memref<16x128xf32, #tpu.memory_space<vmem>>, vector<16x128xf32>,
    return
  }
  func.func @transform_0(%arg0: i32) -> (i32, i32) {
    %c0_i32 = arith.constant 0 : i32
    %c0_i32_0 = arith.constant 0 : i32
    %c0_i32_1 = arith.constant 0 : i32
    return %c0_i32, %c0_i32_0 : i32, i32
  }
  func.func @transform_1(%arg0: i32) -> (i32, i32) {
    %c0_i32 = arith.constant 0 : i32
    %c0_i32_0 = arith.constant 0 : i32
    %c0_i32_1 = arith.constant 0 : i32
    return %c0_i32, %c0_i32_0 : i32, i32
  }
  func.func @transform_2(%arg0: i32) -> (i32, i32) {
    %c0_i32 = arith.constant 0 : i32
    %c0_i32_0 = arith.constant 0 : i32
    %c0_i32_1 = arith.constant 0 : i32
    return %c0_i32, %c0_i32_0 : i32, i32
  }
  func.func @transform_3(%arg0: i32) -> (i32, i32) {
    %c0_i32 = arith.constant 0 : i32
    %c0_i32_0 = arith.constant 0 : i32
    %c0_i32_1 = arith.constant 0 : i32
    return %c0_i32, %c0_i32_0 : i32, i32
  }
  func.func @transform_4(%arg0: i32) -> (i32, i32) {
    %c0_i32 = arith.constant 0 : i32
    %c0_i32_0 = arith.constant 0 : i32
    %c0_i32_1 = arith.constant 0 : i32
    return %c0_i32, %c0_i32_0 : i32, i32
  }
  func.func @transform_5(%arg0: i32) -> (i32, i32) {
    %c0_i32 = arith.constant 0 : i32
    %c0_i32_0 = arith.constant 0 : i32
    %c0_i32_1 = arith.constant 0 : i32
    return %c0_i32, %c0_i32_0 : i32, i32
  }
}

</mosaic_0001>

<bundles_post_ra>
// kernel: tpu_custom_call.1
= control target key start
LH: loop header
LB: loop body
LE: loop exit
PB: predicated region body
PF: predicated region fallthrough
CT: control target
= control target key end

     0   :  { %10 = vsyncpa [#allocation3], 0  ;;  %s488_s0 = inlined_call_operand.hbm [shape: f32[16,32], index: 0, kind: input, shape index: {}]   ;;  %s489_s1 = inlined_call_operand.hbm [shape: f32[32,64], index: 1, kind: input, shape index: {}]   ;;  %s490_s2 = inlined_call_operand.vmem [shape: f32[1,64], index: 2, kind: input, shape index: {}]   ;;  %s491_s3 = inlined_call_operand.hbm [shape: f32[64,128], index: 3, kind: input, shape index: {}]   ;;  %s492_s4 = inlined_call_operand.vmem [shape: f32[1,128], index: 4, kind: input, shape index: {}]   ;;  %s493_s5 = inlined_call_operand.hbm [shape: f32[16,128], index: 5, kind: output, shape index: {}]  }
   0x1   :  { %11 = vsyncpa [#allocation6], 0 }
   0x2   :  { %12 = vsyncpa [#allocation4], 0  ;;  %s420_s18 = smov [#allocation5]   ;;  %s421_s20 = smov [#allocation2]  }
   0x3   :  { %s30_s19 = sshll.u32 %s420_s18, 4  ;;  %s18_s21 = sshll.u32 %s421_s20, 4  ;;  %s31_s19 = int_to_ptr.vmem [resolvable:$true] %s30_s19  ;;  %s19_s21 = int_to_ptr.vmem [resolvable:$true] %s18_s21 }
   0x4   :  { %s342_s22 = scalar_lea.vmem %s31_s19, 512  ;;  %p347_p1 = scmp.lt.s32.totalorder %s31_s19, %s31_s19 }
   0x5   :  { %p343_p0 = scmp.ne.s32.totalorder %s31_s19, %s342_s22  ;;  %p348_p2 = scmp.lt.s32.totalorder %s342_s22, %s342_s22 }
   0x7   :  { %p349_p3 = por %p348_p2, %p347_p1 }
   0x9   :  { %p350_p4 = pnand %p349_p3, %p343_p0 }
   0xb   :  { %353 = shalt.err (!%p350_p4)
}
   0xc   :  { %s422_s23 = smov 128   ;;  %s423_s24 = smov 8  }
   0xd   :  { %36 = dma.hbm_to_vmem [thread:$0]  %s489_s1, 512, %s31_s19, [#allocation6], %s422_s23, %s422_s23, %s423_s24  }
   0xe   :  { %s362_s27 = scalar_lea.vmem %s19_s21, 256  ;;  %p367_p6 = scmp.lt.s32.totalorder %s19_s21, %s19_s21 }
   0xf   :  { %p363_p5 = scmp.ne.s32.totalorder %s19_s21, %s362_s27  ;;  %p368_p7 = scmp.lt.s32.totalorder %s362_s27, %s362_s27 }
  0x11   :  { %p369_p8 = por %p368_p7, %p367_p6 }
  0x13   :  { %p370_p9 = pnand %p369_p8, %p363_p5 }
  0x15   :  { %373 = shalt.err (!%p370_p9)
}
  0x16   :  { %24 = dma.hbm_to_vmem [thread:$0]  %s488_s0, 256, %s19_s21, [#allocation3], %s422_s23, %s422_s23, %s423_s24  }
  0x17   :  { %s424_s30 = smov [#allocation7]  }
  0x18   :  { %s44_s6 = sshll.u32 %s424_s30, 4  ;;  %s45_s6 = int_to_ptr.vmem [resolvable:$true] %s44_s6 }
  0x19   :  { %s382_s7 = scalar_lea.vmem %s45_s6, 1024  ;;  %p387_p11 = scmp.lt.s32.totalorder %s45_s6, %s45_s6 }
  0x1a   :  { %p383_p10 = scmp.ne.s32.totalorder %s45_s6, %s382_s7  ;;  %p388_p12 = scmp.lt.s32.totalorder %s382_s7, %s382_s7 }
  0x1c   :  { %p389_p13 = por %p388_p12, %p387_p11 }
  0x1e   :  { %p390_p0 = pnand %p389_p13, %p383_p10 }
  0x20   :  { %393 = shalt.err (!%p390_p0)
}
  0x21   :  { %50 = dma.hbm_to_vmem [thread:$0]  %s491_s3, 1024, %s45_s6, [#allocation6], %s422_s23, %s422_s23, %s423_s24  }
  0x22   :  { %414 = dma.done.wait [#allocation3], 256  }
  0x23   :  { %415 = vsyncadd [#allocation3], 4294967040 }
  0x24   :  { %416 = dma.done.wait [#allocation6], 1536  }
  0x25   :  { %417 = vsyncadd [#allocation6], 4294965760  ;;  %vm76_vm0 = vcmask 261120   ;;  %v69_v0 = vld [vmem:[#allocation5 + $0x18] sm:$0xff]  ;;  %v68_v1 = vld [vmem:[#allocation5 + $0x10] sm:$0xff]  ;;  %vm174_vm1 = vcmask 523264  }
  0x26   :  { %298 = vmatprep.subr.mxu0 %v69_v0  ;;  %v62_v2 = vld [vmem:[#allocation2] sm:$0xff]  ;;  %v67_v3 = vld [vmem:[#allocation5 + $0x8] sm:$0xff]  ;;  %v167_v4 = vld [vmem:[#allocation7 + $0x38] sm:$0xff]  ;;  %s425_s11 = smov [#allocation8]  }
  0x27   :  { %299 = vmatpush3.msra.mxu0 %v69_v0  ;;  %306 = vmatprep.mubr.msk.f32.mxu0 %vm76_vm0, %v62_v2  ;;  %v166_v5 = vld [vmem:[#allocation7 + $0x30] sm:$0xff]  ;;  %v66_v6 = vld [vmem:[#allocation5] sm:$0xff]  ;;  %v165_v7 = vld [vmem:[#allocation7 + $0x28] sm:$0xff]  ;;  %s263_s12 = sshll.u32 %s425_s11, 4  ;;  %s264_s12 = int_to_ptr.vmem [resolvable:$true] %s263_s12 }
  0x28   :  { %300 = vmatprep.subr.mxu0 %v68_v1  ;;  %309 = vmatprep.subr.mxu1 %v167_v4  ;;  %v63_v8 = vld [vmem:[#allocation2 + $0x8] sm:$0xff]  ;;  %v164_v9 = vld [vmem:[#allocation7 + $0x20] sm:$0xff]  ;;  %v162_v11 = vld [vmem:[#allocation7 + $0x10] sm:$0xff]  ;;  %p399_p2 = scmp.lt.s32.totalorder %s264_s12, %s264_s12 }
  0x29   :  { %301 = vmatpush3.msra.mxu0 %v68_v1  ;;  %310 = vmatpush3.msra.mxu1 %v167_v4  ;;  %v163_v10 = vld [vmem:[#allocation7 + $0x18] sm:$0xff]  ;;  %v161_v12 = vld [vmem:[#allocation7 + $0x8] sm:$0xff]  ;;  %v160_v13 = vld [vmem:[#allocation7] sm:$0xff] }
  0x2a   :  { %302 = vmatprep.subr.mxu0 %v67_v3  ;;  %311 = vmatprep.subr.mxu1 %v166_v5  ;;  %v276_v14 = vld [vmem:[%s490_s2] ss:$0 sm:$0xff]  ;;  %s394_s2 = scalar_lea.vmem %s264_s12, 256 }
  0x2b   :  { %303 = vmatpush3.msra.mxu0 %v67_v3  ;;  %312 = vmatpush3.msra.mxu1 %v166_v5  ;;  %v279_v21 = vld [vmem:[%s492_s4] ss:$0 sm:$0xff]  ;;  %p395_p1 = scmp.ne.s32.totalorder %s264_s12, %s394_s2  ;;  %p400_p3 = scmp.lt.s32.totalorder %s394_s2, %s394_s2 }
  0x2c   :  { %304 = vmatprep.subr.mxu0 %v66_v6  ;;  %313 = vmatprep.subr.mxu1 %v165_v7 }
  0x2d   :  { %305 = vmatpush3.msra.mxu0 %v66_v6  ;;  %314 = vmatpush3.msra.mxu1 %v165_v7  ;;  %p401_p4 = por %p400_p3, %p399_p2 }
  0x2e   :  { %307 = vmatmul.mubr.msk.f32.vlgmr.msra.gmra.mxu0 %vm76_vm0, %v63_v8  ;;  %315 = vmatprep.subr.mxu1 %v164_v9 }
  0x2f   :  { %316 = vmatpush3.msra.mxu1 %v164_v9  ;;  %p402_p5 = pnand %p401_p4, %p395_p1 }
  0x30   :  { %317 = vmatprep.subr.mxu1 %v163_v10 }
  0x31   :  { %318 = vmatpush3.msra.mxu1 %v163_v10 }
  0x32   :  { %319 = vmatprep.subr.mxu1 %v162_v11 }
  0x33   :  { %320 = vmatpush3.msra.mxu1 %v162_v11 }
  0x34   :  { %321 = vmatprep.subr.mxu1 %v161_v12 }
  0x35   :  { %322 = vmatpush3.msra.mxu1 %v161_v12 }
  0x36   :  { %323 = vmatprep.subr.mxu1 %v160_v13 }
  0x37   :  { %324 = vmatpush3.msra.mxu1 %v160_v13 }
  0xee   :  { %v308_v15 = vpop.f32.mrf.mxu0 }
  0xef   :  { %v155_v16 = vadd.f32 %v308_v15, %v276_v14 }
  0xf0   :  { %v149_v17 = vpop.f32.mrf.mxu0 }
  0xf1   :  { %v150_v18 = vadd.f32 %v276_v14, %v149_v17  ;;  %v159_v20 = vmax.f32 %v155_v16, 0.0 }
  0xf3   :  { %v158_v19 = vmax.f32 %v150_v18, 0.0 }
  0xf5   :  { %325 = vmatprep.mubr.msk.f32.mxu1 %vm174_vm1, %v158_v19 }
  0xf6   :  { %326 = vmatmul.mubr.msk.f32.vlgmr.msra.gmra.mxu1 %vm174_vm1, %v159_v20 }
 0x1b6   :  { %v327_v22 = vpop.f32.mrf.mxu1 }
 0x1b7   :  { %v253_v23 = vadd.f32 %v327_v22, %v279_v21 }
 0x1b8   :  { %v247_v24 = vpop.f32.mrf.mxu1 }
 0x1b9   :  { %257 = vst [vmem:[#allocation8 + $0x8] sm:$0xff] %v253_v23  ;;  %v248_v25 = vadd.f32 %v279_v21, %v247_v24 }
 0x1bb   :  { %256 = vst [vmem:[#allocation8] sm:$0xff] %v248_v25 }
 0x1bc   :  { %405 = shalt.err (!%p402_p5)
}
 0x1bd   :  { %269 = dma.vmem_to_hbm [thread:$0]  %s264_s12, 256, %s493_s5, [#allocation4], %s422_s23, %s422_s23, %s423_s24  }
 0x1be   :  { %418 = dma.done.wait [#allocation4], 256  }
 0x1bf   :  { %419 = vsyncadd [#allocation4], 4294967040 }
 0x1c0   :  { %273 = vsyncpa [#allocation3], 1 }
 0x1c1   :  { %274 = vsyncpa [#allocation6], 1 }
 0x1c2   :  { %275 = vsyncpa [#allocation4], 1 }

</bundles_post_ra>
